<compile_context>
chip_gen: v7x
topology: tpu7x:2x2x1
jax: 0.10.0
libtpu: 0.0.40
codegen_flags: <defaults>
</compile_context>

<pallas_src>
import functools

import jax
import jax.numpy as jnp
from jax.experimental import pallas as pl
from jax.experimental.pallas import tpu as pltpu


def vncl_cell_kernel(
    x_ref, s_ref, v_ref, h_ref, c_ref,
    Wa_ref, S_ref, Ca_ref, Ua_ref,        # first-stage fused weights
    Wc_ref, Cc_ref, Uc_ref, b_ref,        # second-stage block-diag weights + bias
    out_ref,                              # (B, 2H): [h_new | c_new]
):
  x = x_ref[...]
  s = s_ref[...]
  v = v_ref[...]
  h = h_ref[...]
  c_prev = c_ref[...]

  # ---- first stage: 4 lane-dense matmuls (gates fused into lanes) ----------
  t1 = jnp.dot(x, Wa_ref[...], preferred_element_type=jnp.float32)     # (B, 4R)
  s_all = jnp.dot(s, S_ref[...], preferred_element_type=jnp.float32)   # (B, 12R)
  t3 = jnp.dot(v, Ca_ref[...], preferred_element_type=jnp.float32)     # (B, 4R)
  t6 = jnp.dot(h, Ua_ref[...], preferred_element_type=jnp.float32)     # (B, 4R)

  four_r = t1.shape[1]
  t2 = s_all[:, :four_r]                 # s @ Wb   (all gates)
  t4 = s_all[:, four_r:2 * four_r]       # s @ Cb   (all gates)
  t5 = s_all[:, 2 * four_r:]             # s @ Ub   (all gates)

  # ---- second stage: 3 block-diagonal matmuls -> (B, 4H) gate logits -------
  logits = (
      jnp.dot(t1 * t2, Wc_ref[...], preferred_element_type=jnp.float32)
      + jnp.dot(t3 * t4, Cc_ref[...], preferred_element_type=jnp.float32)
      + jnp.dot(t5 * t6, Uc_ref[...], preferred_element_type=jnp.float32)
      + b_ref[...]                       # (1, 4H) broadcast over batch
  )

  four_h = logits.shape[1]
  hidden = four_h // 4

  # sigmoid on the i/f/o lanes [0, 3H), tanh on the c lanes [3H, 4H).
  lane = jax.lax.broadcasted_iota(jnp.int32, logits.shape, 1)
  acts = jnp.where(lane < 3 * hidden,
                   jax.nn.sigmoid(logits),
                   jnp.tanh(logits))

  i_g = acts[:, 0 * hidden:1 * hidden]
  f_g = acts[:, 1 * hidden:2 * hidden]
  o_g = acts[:, 2 * hidden:3 * hidden]
  c_bar = acts[:, 3 * hidden:4 * hidden]

  c_new = f_g * c_prev + i_g * c_bar
  h_new = o_g * jnp.tanh(c_new)

  # single lane-dense store: [h_new | c_new]
  out_ref[...] = jnp.concatenate([h_new, c_new], axis=1).astype(out_ref.dtype)


def pack_params(params):
  """Pack the per-gate (4, K, N) weights into lane-dense fused weights."""
  Wa, Wb, Ca, Cb, Ub, Ua, Wc, Cc, Uc, b = params

  def stack_lanes(w):  # (4, K, R) -> (K, 4R), gate-major along lanes
    g, k, r = w.shape
    return jnp.transpose(w, (1, 0, 2)).reshape(k, g * r)

  def block_diag(w):   # (4, R, H) -> (4R, 4H), gate-blocked on both axes
    g, r, h = w.shape
    out = jnp.zeros((g * r, g * h), dtype=w.dtype)
    for gi in range(g):
      out = out.at[gi * r:(gi + 1) * r, gi * h:(gi + 1) * h].set(w[gi])
    return out

  Wa_p = stack_lanes(Wa)                                        # (in, 4R)
  S_p = jnp.concatenate(
      [stack_lanes(Wb), stack_lanes(Cb), stack_lanes(Ub)], axis=1)  # (tags, 12R)
  Ca_p = stack_lanes(Ca)                                        # (feats, 4R)
  Ua_p = stack_lanes(Ua)                                        # (hid, 4R)
  Wc_p = block_diag(Wc)                                         # (4R, 4H)
  Cc_p = block_diag(Cc)                                         # (4R, 4H)
  Uc_p = block_diag(Uc)                                         # (4R, 4H)
  b_p = b.reshape(1, -1)                                        # (1, 4H)
  return (Wa_p, S_p, Ca_p, Ua_p, Wc_p, Cc_p, Uc_p, b_p)


@jax.jit
def vncl_cell(s, rnn_h, rnn_c, decoder_input, v, packed_params):
  """Runs one VNCLCell step. All arrays float32, shape (batch, feat)."""
  (Wa_p, S_p, Ca_p, Ua_p, Wc_p, Cc_p, Uc_p, b_p) = packed_params
  B = decoder_input.shape[0]
  hidden = rnn_h.shape[1]

  inputs = (decoder_input, s, v, rnn_h, rnn_c,
            Wa_p, S_p, Ca_p, Ua_p, Wc_p, Cc_p, Uc_p, b_p)

  vmem = pl.BlockSpec(memory_space=pltpu.MemorySpace.VMEM)
  out = pl.pallas_call(
      vncl_cell_kernel,
      out_shape=jax.ShapeDtypeStruct((B, 2 * hidden), jnp.float32),
      in_specs=[vmem] * len(inputs),
      out_specs=vmem,
  )(*inputs)
  # TODO(synk): for large batches on v7x add a batch grid axis with
  #             dimension_semantics=("parallel",) to use both TensorCores.
  h_new = out[:, :hidden]
  c_new = out[:, hidden:]
  return h_new, c_new


def make_params(key, rnn_in_size, n_tags, n_feats, rnn_hidden_size, hidden_size):
  """Deterministic synthetic weights, stacked over the 4 gates (i, f, o, c)."""
  ks = jax.random.split(key, 10)
  scale = 0.1

  def w(k, shape):
    return scale * jax.random.normal(k, (4,) + shape, dtype=jnp.float32)

  Wa = w(ks[0], (rnn_in_size, rnn_hidden_size))      # Wa_{i,f,o,c}
  Wb = w(ks[1], (n_tags, rnn_hidden_size))           # Wb_{i,f,o,c}
  Ca = w(ks[2], (n_feats, rnn_hidden_size))          # Ca_{i,f,o,c}
  Cb = w(ks[3], (n_tags, rnn_hidden_size))           # Cb_{i,f,o,c}
  Ub = w(ks[4], (n_tags, rnn_hidden_size))           # Ub_{i,f,o,c}
  Ua = w(ks[5], (hidden_size, rnn_hidden_size))      # Ua_{i,f,o,c}
  Wc = w(ks[6], (rnn_hidden_size, hidden_size))      # Wc_{i,f,o,c}
  Cc = w(ks[7], (rnn_hidden_size, hidden_size))      # Cc_{i,f,o,c}
  Uc = w(ks[8], (rnn_hidden_size, hidden_size))      # Uc_{i,f,o,c}
  b = jnp.zeros((4, 1, hidden_size), dtype=jnp.float32)  # b_{i,f,o,c}
  return (Wa, Wb, Ca, Cb, Ub, Ua, Wc, Cc, Uc, b)


def vncl_cell_ref(s, rnn_h, rnn_c, x, v, params):
  """Pure-JAX reference mirroring the PyTorch forward (dropout is identity)."""
  (Wa, Wb, Ca, Cb, Ub, Ua, Wc, Cc, Uc, b) = params

  def gate(g, act):
    t1 = x @ Wa[g]
    t2 = s @ Wb[g]
    t3 = v @ Ca[g]
    t4 = s @ Cb[g]
    t5 = s @ Ub[g]
    t6 = rnn_h @ Ua[g]
    logits = (t1 * t2) @ Wc[g] + (t3 * t4) @ Cc[g] + (t5 * t6) @ Uc[g] + b[g]
    return act(logits)

  i = gate(0, jax.nn.sigmoid)
  f = gate(1, jax.nn.sigmoid)
  o = gate(2, jax.nn.sigmoid)
  c_bar = gate(3, jnp.tanh)
  c_new = f * rnn_c + i * c_bar
  h_new = o * jnp.tanh(c_new)
  return h_new, c_new


if __name__ == "__main__":
  # Small shapes consistent with the module's forward.
  B = 8                 # batch
  rnn_in_size = 32      # decoder_input feature dim (embedding-ish)
  n_tags = 16           # semantic tag vector dim (s)
  n_feats = 24          # video/feature vector dim (v)
  rnn_hidden_size = 64  # factorization rank -> fused first-stage width 4R=256
  hidden_size = 32      # LSTM hidden size   -> fused gate-logit width 4H=128

  key = jax.random.PRNGKey(0)
  kp, kx, ks_, kv, kh, kc = jax.random.split(key, 6)

  params = make_params(kp, rnn_in_size, n_tags, n_feats,
                       rnn_hidden_size, hidden_size)
  packed = pack_params(params)   # one-time lane-dense weight packing

  decoder_input = jax.random.normal(kx, (B, rnn_in_size), dtype=jnp.float32)
  s = jax.random.normal(ks_, (B, n_tags), dtype=jnp.float32)
  v = jax.random.normal(kv, (B, n_feats), dtype=jnp.float32)
  rnn_h = jax.random.normal(kh, (B, hidden_size), dtype=jnp.float32)
  rnn_c = jax.random.normal(kc, (B, hidden_size), dtype=jnp.float32)

  h_new, c_new = vncl_cell(s, rnn_h, rnn_c, decoder_input, v, packed)
  jax.block_until_ready((h_new, c_new))

  h_ref, c_ref = vncl_cell_ref(s, rnn_h, rnn_c, decoder_input, v, params)
  assert jnp.allclose(h_new, h_ref, atol=1e-5, rtol=1e-5)
  assert jnp.allclose(c_new, c_ref, atol=1e-5, rtol=1e-5)

  print("KERNEL_OK")
</pallas_src>

<mosaic_0001>
module attributes {stable_mosaic.version = 11 : i64} {
  func.func @vncl_cell_kernel(%arg0: memref<8x32xf32, #tpu.memory_space<vmem>>, %arg1: memref<8x16xf32, #tpu.memory_space<vmem>>, %arg2: memref<8x24xf32, #tpu.memory_space<vmem>>, %arg3: memref<8x32xf32, #tpu.memory_space<vmem>>, %arg4: memref<8x32xf32, #tpu.memory_space<vmem>>, %arg5: memref<32x256xf32, #tpu.memory_space<vmem>>, %arg6: memref<16x768xf32, #tpu.memory_space<vmem>>, %arg7: memref<24x256xf32, #tpu.memory_space<vmem>>, %arg8: memref<32x256xf32, #tpu.memory_space<vmem>>, %arg9: memref<256x128xf32, #tpu.memory_space<vmem>>, %arg10: memref<256x128xf32, #tpu.memory_space<vmem>>, %arg11: memref<256x128xf32, #tpu.memory_space<vmem>>, %arg12: memref<1x128xf32, #tpu.memory_space<vmem>>, %arg13: memref<8x64xf32, #tpu.memory_space<vmem>>) attributes {dimension_semantics = [], scalar_prefetch = 0 : i64, scratch_operands = 0 : i64, tpu.core_type = #tpu.core_type<tc>} {
    %c0 = arith.constant 0 : index
    %c0_0 = arith.constant 0 : index
    %0 = vector.load %arg0[%c0, %c0_0] : memref<8x32xf32, #tpu.memory_space<vmem>>, vector<8x32xf32>
    %c0_1 = arith.constant 0 : index
    %c0_2 = arith.constant 0 : index
    %1 = vector.load %arg1[%c0_1, %c0_2] : memref<8x16xf32, #tpu.memory_space<vmem>>, vector<8x16xf32>
    %c0_3 = arith.constant 0 : index
    %c0_4 = arith.constant 0 : index
    %2 = vector.load %arg2[%c0_3, %c0_4] : memref<8x24xf32, #tpu.memory_space<vmem>>, vector<8x24xf32>
    %c0_5 = arith.constant 0 : index
    %c0_6 = arith.constant 0 : index
    %3 = vector.load %arg3[%c0_5, %c0_6] : memref<8x32xf32, #tpu.memory_space<vmem>>, vector<8x32xf32>
    %c0_7 = arith.constant 0 : index
    %c0_8 = arith.constant 0 : index
    %4 = vector.load %arg4[%c0_7, %c0_8] : memref<8x32xf32, #tpu.memory_space<vmem>>, vector<8x32xf32>
    %c0_9 = arith.constant 0 : index
    %c0_10 = arith.constant 0 : index
    %5 = vector.load %arg5[%c0_9, %c0_10] : memref<32x256xf32, #tpu.memory_space<vmem>>, vector<32x256xf32>
    %cst = arith.constant dense<0.000000e+00> : vector<8x256xf32>
    %6 = tpu.matmul %0, %5, %cst {dimension_numbers = #tpu.dot_dimension_numbers<[1], [0], [0], [1], [0, 0, 1, 1], [], []>} : vector<8x32xf32>, vector<32x256xf32>, vector<8x256xf32> -> vector<8x256xf32>
    %c0_11 = arith.constant 0 : index
    %c0_12 = arith.constant 0 : index
    %7 = vector.load %arg6[%c0_11, %c0_12] : memref<16x768xf32, #tpu.memory_space<vmem>>, vector<16x768xf32>
    %cst_13 = arith.constant dense<0.000000e+00> : vector<8x768xf32>
    %8 = tpu.matmul %1, %7, %cst_13 {dimension_numbers = #tpu.dot_dimension_numbers<[1], [0], [0], [1], [0, 0, 1, 1], [], []>} : vector<8x16xf32>, vector<16x768xf32>, vector<8x768xf32> -> vector<8x768xf32>
    %c0_14 = arith.constant 0 : index
    %c0_15 = arith.constant 0 : index
    %9 = vector.load %arg7[%c0_14, %c0_15] : memref<24x256xf32, #tpu.memory_space<vmem>>, vector<24x256xf32>
    %cst_16 = arith.constant dense<0.000000e+00> : vector<8x256xf32>
    %10 = tpu.matmul %2, %9, %cst_16 {dimension_numbers = #tpu.dot_dimension_numbers<[1], [0], [0], [1], [0, 0, 1, 1], [], []>} : vector<8x24xf32>, vector<24x256xf32>, vector<8x256xf32> -> vector<8x256xf32>
    %c0_17 = arith.constant 0 : index
    %c0_18 = arith.constant 0 : index
    %11 = vector.load %arg8[%c0_17, %c0_18] : memref<32x256xf32, #tpu.memory_space<vmem>>, vector<32x256xf32>
    %cst_19 = arith.constant dense<0.000000e+00> : vector<8x256xf32>
    %12 = tpu.matmul %3, %11, %cst_19 {dimension_numbers = #tpu.dot_dimension_numbers<[1], [0], [0], [1], [0, 0, 1, 1], [], []>} : vector<8x32xf32>, vector<32x256xf32>, vector<8x256xf32> -> vector<8x256xf32>
    %13 = vector.extract_strided_slice %8 {offsets = [0, 0], sizes = [8, 256], strides = [1, 1]} : vector<8x768xf32> to vector<8x256xf32>
    %14 = vector.extract_strided_slice %8 {offsets = [0, 256], sizes = [8, 256], strides = [1, 1]} : vector<8x768xf32> to vector<8x256xf32>
    %15 = vector.extract_strided_slice %8 {offsets = [0, 512], sizes = [8, 256], strides = [1, 1]} : vector<8x768xf32> to vector<8x256xf32>
    %16 = arith.mulf %6, %13 : vector<8x256xf32>
    %c0_20 = arith.constant 0 : index
    %c0_21 = arith.constant 0 : index
    %17 = vector.load %arg9[%c0_20, %c0_21] : memref<256x128xf32, #tpu.memory_space<vmem>>, vector<256x128xf32>
    %cst_22 = arith.constant dense<0.000000e+00> : vector<8x128xf32>
    %18 = tpu.matmul %16, %17, %cst_22 {dimension_numbers = #tpu.dot_dimension_numbers<[1], [0], [0], [1], [0, 0, 1, 1], [], []>} : vector<8x256xf32>, vector<256x128xf32>, vector<8x128xf32> -> vector<8x128xf32>
    %19 = arith.mulf %10, %14 : vector<8x256xf32>
    %c0_23 = arith.constant 0 : index
    %c0_24 = arith.constant 0 : index
    %20 = vector.load %arg10[%c0_23, %c0_24] : memref<256x128xf32, #tpu.memory_space<vmem>>, vector<256x128xf32>
    %cst_25 = arith.constant dense<0.000000e+00> : vector<8x128xf32>
    %21 = tpu.matmul %19, %20, %cst_25 {dimension_numbers = #tpu.dot_dimension_numbers<[1], [0], [0], [1], [0, 0, 1, 1], [], []>} : vector<8x256xf32>, vector<256x128xf32>, vector<8x128xf32> -> vector<8x128xf32>
    %22 = arith.addf %18, %21 : vector<8x128xf32>
    %23 = arith.mulf %15, %12 : vector<8x256xf32>
    %c0_26 = arith.constant 0 : index
    %c0_27 = arith.constant 0 : index
    %24 = vector.load %arg11[%c0_26, %c0_27] : memref<256x128xf32, #tpu.memory_space<vmem>>, vector<256x128xf32>
    %cst_28 = arith.constant dense<0.000000e+00> : vector<8x128xf32>
    %25 = tpu.matmul %23, %24, %cst_28 {dimension_numbers = #tpu.dot_dimension_numbers<[1], [0], [0], [1], [0, 0, 1, 1], [], []>} : vector<8x256xf32>, vector<256x128xf32>, vector<8x128xf32> -> vector<8x128xf32>
    %26 = arith.addf %22, %25 : vector<8x128xf32>
    %c0_29 = arith.constant 0 : index
    %c0_30 = arith.constant 0 : index
    %27 = vector.load %arg12[%c0_29, %c0_30] : memref<1x128xf32, #tpu.memory_space<vmem>>, vector<1x128xf32>
    %28 = vector.broadcast %27 : vector<1x128xf32> to vector<8x128xf32>
    %29 = arith.addf %26, %28 : vector<8x128xf32>
    %30 = tpu.iota {dimensions = array<i32: 1>} : vector<8x128xi32>
    %c96_i32 = arith.constant 96 : i32
    %31 = vector.broadcast %c96_i32 : i32 to vector<8x128xi32>
    %32 = arith.cmpi slt, %30, %31 : vector<8x128xi32>
    %33 = arith.negf %29 : vector<8x128xf32>
    %34 = math.exp %33 : vector<8x128xf32>
    %cst_31 = arith.constant 1.000000e+00 : f32
    %35 = vector.broadcast %cst_31 : f32 to vector<8x128xf32>
    %36 = arith.addf %35, %34 : vector<8x128xf32>
    %37 = arith.divf %35, %36 : vector<8x128xf32>
    %38 = math.tanh %29 : vector<8x128xf32>
    %39 = arith.select %32, %37, %38 : vector<8x128xi1>, vector<8x128xf32>
    %40 = vector.extract_strided_slice %39 {offsets = [0, 0], sizes = [8, 32], strides = [1, 1]} : vector<8x128xf32> to vector<8x32xf32>
    %41 = vector.extract_strided_slice %39 {offsets = [0, 32], sizes = [8, 32], strides = [1, 1]} : vector<8x128xf32> to vector<8x32xf32>
    %42 = vector.extract_strided_slice %39 {offsets = [0, 64], sizes = [8, 32], strides = [1, 1]} : vector<8x128xf32> to vector<8x32xf32>
    %43 = vector.extract_strided_slice %39 {offsets = [0, 96], sizes = [8, 32], strides = [1, 1]} : vector<8x128xf32> to vector<8x32xf32>
    %44 = arith.mulf %41, %4 : vector<8x32xf32>
    %45 = arith.mulf %40, %43 : vector<8x32xf32>
    %46 = arith.addf %44, %45 : vector<8x32xf32>
    %47 = math.tanh %46 : vector<8x32xf32>
    %48 = arith.mulf %42, %47 : vector<8x32xf32>
    %49 = tpu.concatenate %48, %46 in 1 : vector<8x32xf32>, vector<8x32xf32> -> vector<8x64xf32>
    %c0_32 = arith.constant 0 : index
    %c0_33 = arith.constant 0 : index
    %50 = vector.load %arg13[%c0_32, %c0_33] : memref<8x64xf32, #tpu.memory_space<vmem>>, vector<8x64xf32>
    tpu.vector_store %arg13[%c0_32, %c0_33], %49 {strides = array<i32>} : memref<8x64xf32, #tpu.memory_space<vmem>>, vector<8x64xf32>,
    return
  }
}

</mosaic_0001>

<bundles_post_ra>
// kernel: vncl_cell.1
= control target key start
LH: loop header
LB: loop body
LE: loop exit
PB: predicated region body
PF: predicated region fallthrough
CT: control target
= control target key end

     0   :  { %18 = vsyncpa [#allocation3], 0  ;;  %s1833_s0 = inlined_call_operand.vmem [shape: f32[8,32], index: 0, kind: input, shape index: {}]   ;;  %s1834_s1 = inlined_call_operand.hbm [shape: f32[8,16], index: 1, kind: input, shape index: {}]   ;;  %s1835_s2 = inlined_call_operand.hbm [shape: f32[8,24], index: 2, kind: input, shape index: {}]   ;;  %s1836_s3 = inlined_call_operand.hbm [shape: f32[8,32], index: 3, kind: input, shape index: {}]   ;;  %s1837_s4 = inlined_call_operand.hbm [shape: f32[8,32], index: 4, kind: input, shape index: {}]   ;;  %s1838_s5 = inlined_call_operand.hbm [shape: f32[32,256], index: 5, kind: input, shape index: {}]   ;;  %s1839_s6 = inlined_call_operand.hbm [shape: f32[16,768], index: 6, kind: input, shape index: {}]   ;;  %s1840_s7 = inlined_call_operand.hbm [shape: f32[24,256], index: 7, kind: input, shape index: {}]   ;;  %s1841_s8 = inlined_call_operand.hbm [shape: f32[32,256], index: 8, kind: input, shape index: {}]   ;;  %s1842_s9 = inlined_call_operand.hbm [shape: f32[256,128], index: 9, kind: input, shape index: {}]   ;;  %s1843_s10 = inlined_call_operand.hbm [shape: f32[256,128], index: 10, kind: input, shape index: {}]   ;;  %s1844_s11 = inlined_call_operand.hbm [shape: f32[256,128], index: 11, kind: input, shape index: {}]   ;;  %s1845_s12 = inlined_call_operand.vmem [shape: f32[1,128], index: 12, kind: input, shape index: {}]   ;;  %s1846_s13 = inlined_call_operand.vmem [shape: f32[8,64], index: 13, kind: output, shape index: {}]  }
   0x1   :  { %19 = vsyncpa [#allocation5], 0 }
   0x2   :  { %20 = vsyncpa [#allocation8], 0 }
   0x3   :  { %21 = vsyncpa [#allocation11], 0 }
   0x4   :  { %22 = vsyncpa [#allocation14], 0 }
   0x5   :  { %23 = vsyncpa [#allocation17], 0  ;;  %s1558_s25 = smov [#allocation4]   ;;  %s1559_s27 = smov [#allocation7]  }
   0x6   :  { %s42_s26 = sshll.u32 %s1558_s25, 4  ;;  %s62_s28 = sshll.u32 %s1559_s27, 4  ;;  %s43_s26 = int_to_ptr.vmem [resolvable:$true] %s42_s26  ;;  %s63_s28 = int_to_ptr.vmem [resolvable:$true] %s62_s28 }
   0x7   :  { %s1304_s14 = scalar_lea.hbm %s1835_s2, 128 }
   0x8   :  { %p1305_p0 = scmp.ne.s32.totalorder %s1835_s2, %s1304_s14  ;;  %p1308_p1 = scmp.lt.u32.totalorder %s1304_s14, %s1835_s2 }
   0xa   :  { %p1310_p2 = pnand %p1308_p1, %p1305_p0 }
   0xc   :  { %1313 = shalt.err (!%p1310_p2)
}
   0xd   :  { %s1314_s19 = scalar_lea.vmem %s43_s26, 128  ;;  %p1319_p4 = scmp.lt.s32.totalorder %s43_s26, %s43_s26 }
   0xe   :  { %p1315_p3 = scmp.ne.s32.totalorder %s43_s26, %s1314_s19  ;;  %p1320_p5 = scmp.lt.s32.totalorder %s1314_s19, %s1314_s19 }
  0x10   :  { %p1321_p6 = por %p1320_p5, %p1319_p4 }
  0x12   :  { %p1322_p7 = pnand %p1321_p6, %p1315_p3 }
  0x14   :  { %1325 = shalt.err (!%p1322_p7)
}
  0x15   :  { %45 = dma.hbm_to_vmem [thread:$0]  %s1835_s2, 128, %s43_s26, [#allocation5]  }
  0x16   :  { %s1326_s24 = scalar_lea.hbm %s1837_s4, 128 }
  0x17   :  { %p1327_p8 = scmp.ne.s32.totalorder %s1837_s4, %s1326_s24  ;;  %p1330_p9 = scmp.lt.u32.totalorder %s1326_s24, %s1837_s4 }
  0x19   :  { %p1332_p10 = pnand %p1330_p9, %p1327_p8 }
  0x1b   :  { %1335 = shalt.err (!%p1332_p10)
}
  0x1c   :  { %s1336_s14 = scalar_lea.vmem %s63_s28, 128  ;;  %p1341_p12 = scmp.lt.s32.totalorder %s63_s28, %s63_s28 }
  0x1d   :  { %p1337_p11 = scmp.ne.s32.totalorder %s63_s28, %s1336_s14  ;;  %p1342_p13 = scmp.lt.s32.totalorder %s1336_s14, %s1336_s14 }
  0x1f   :  { %p1343_p0 = por %p1342_p13, %p1341_p12 }
  0x21   :  { %p1344_p1 = pnand %p1343_p0, %p1337_p11 }
  0x23   :  { %1347 = shalt.err (!%p1344_p1)
}
  0x24   :  { %65 = dma.hbm_to_vmem [thread:$0]  %s1837_s4, 128, %s63_s28, [#allocation8]  }
  0x25   :  { %s1560_s15 = smov [#allocation10]   ;;  %s1348_s19 = scalar_lea.hbm %s1839_s6, 1536 }
  0x26   :  { %s83_s16 = sshll.u32 %s1560_s15, 4  ;;  %p1349_p2 = scmp.ne.s32.totalorder %s1839_s6, %s1348_s19  ;;  %s84_s16 = int_to_ptr.vmem [resolvable:$true] %s83_s16 }
  0x27   :  { %p1352_p3 = scmp.lt.u32.totalorder %s1348_s19, %s1839_s6 }
  0x29   :  { %p1354_p4 = pnand %p1352_p3, %p1349_p2 }
  0x2b   :  { %1357 = shalt.err (!%p1354_p4)
}
  0x2c   :  { %s1358_s24 = scalar_lea.vmem %s84_s16, 1536  ;;  %p1363_p6 = scmp.lt.s32.totalorder %s84_s16, %s84_s16 }
  0x2d   :  { %p1359_p5 = scmp.ne.s32.totalorder %s84_s16, %s1358_s24  ;;  %p1364_p7 = scmp.lt.s32.totalorder %s1358_s24, %s1358_s24 }
  0x2f   :  { %p1365_p8 = por %p1364_p7, %p1363_p6 }
  0x31   :  { %p1366_p9 = pnand %p1365_p8, %p1359_p5 }
  0x33   :  { %1369 = shalt.err (!%p1366_p9)
}
  0x34   :  { %s1561_s4 = smov 768   ;;  %s1562_s28 = smov 48  }
  0x35   :  { %89 = dma.hbm_to_vmem [thread:$0]  %s1839_s6, 1536, %s84_s16, [#allocation11], %s1561_s4, %s1561_s4, %s1562_s28  }
  0x36   :  { %s1563_s29 = smov [#allocation13]   ;;  %s1370_s26 = scalar_lea.hbm %s1841_s8, 1024 }
  0x37   :  { %s107_s30 = sshll.u32 %s1563_s29, 4  ;;  %p1371_p10 = scmp.ne.s32.totalorder %s1841_s8, %s1370_s26  ;;  %s108_s30 = int_to_ptr.vmem [resolvable:$true] %s107_s30 }
  0x38   :  { %p1374_p11 = scmp.lt.u32.totalorder %s1370_s26, %s1841_s8 }
  0x3a   :  { %p1376_p12 = pnand %p1374_p11, %p1371_p10 }
  0x3c   :  { %1379 = shalt.err (!%p1376_p12)
}
  0x3d   :  { %s1380_s20 = scalar_lea.vmem %s108_s30, 1024  ;;  %p1385_p0 = scmp.lt.s32.totalorder %s108_s30, %s108_s30 }
  0x3e   :  { %p1381_p13 = scmp.ne.s32.totalorder %s108_s30, %s1380_s20  ;;  %p1386_p1 = scmp.lt.s32.totalorder %s1380_s20, %s1380_s20 }
  0x40   :  { %p1387_p2 = por %p1386_p1, %p1385_p0 }
  0x42   :  { %p1388_p3 = pnand %p1387_p2, %p1381_p13 }
  0x44   :  { %1391 = shalt.err (!%p1388_p3)
}
  0x45   :  { %s1564_s6 = smov 256   ;;  %s1565_s16 = smov 16  }
  0x46   :  { %113 = dma.hbm_to_vmem [thread:$0]  %s1841_s8, 1024, %s108_s30, [#allocation14], %s1564_s6, %s1564_s6, %s1565_s16  }
  0x47   :  { %s1566_s23 = smov [#allocation16]   ;;  %s1567_s4 = smov [#allocation2]  }
  0x48   :  { %s131_s24 = sshll.u32 %s1566_s23, 4  ;;  %s32_s28 = sshll.u32 %s1567_s4, 4  ;;  %s132_s24 = int_to_ptr.vmem [resolvable:$true] %s131_s24  ;;  %s33_s28 = int_to_ptr.vmem [resolvable:$true] %s32_s28 }
  0x49   :  { %s1392_s29 = scalar_lea.hbm %s1843_s10, 4096 }
  0x4a   :  { %p1393_p4 = scmp.ne.s32.totalorder %s1843_s10, %s1392_s29  ;;  %p1396_p5 = scmp.lt.u32.totalorder %s1392_s29, %s1843_s10 }
  0x4c   :  { %p1398_p6 = pnand %p1396_p5, %p1393_p4 }
  0x4e   :  { %1401 = shalt.err (!%p1398_p6)
}
  0x4f   :  { %s1402_s8 = scalar_lea.vmem %s132_s24, 4096  ;;  %p1407_p8 = scmp.lt.s32.totalorder %s132_s24, %s132_s24 }
  0x50   :  { %p1403_p7 = scmp.ne.s32.totalorder %s132_s24, %s1402_s8  ;;  %p1408_p9 = scmp.lt.s32.totalorder %s1402_s8, %s1402_s8 }
  0x52   :  { %p1409_p10 = por %p1408_p9, %p1407_p8 }
  0x54   :  { %p1410_p11 = pnand %p1409_p10, %p1403_p7 }
  0x56   :  { %1413 = shalt.err (!%p1410_p11)
}
  0x57   :  { %s1568_s30 = smov 128   ;;  %s1569_s17 = smov 8  }
  0x58   :  { %137 = dma.hbm_to_vmem [thread:$0]  %s1843_s10, 4096, %s132_s24, [#allocation17], %s1568_s30, %s1568_s30, %s1569_s17  }
  0x59   :  { %s1414_s22 = scalar_lea.hbm %s1834_s1, 128 }
  0x5a   :  { %p1415_p12 = scmp.ne.s32.totalorder %s1834_s1, %s1414_s22  ;;  %p1418_p13 = scmp.lt.u32.totalorder %s1414_s22, %s1834_s1 }
  0x5c   :  { %p1420_p0 = pnand %p1418_p13, %p1415_p12 }
  0x5e   :  { %1423 = shalt.err (!%p1420_p0)
}
  0x5f   :  { %s1424_s29 = scalar_lea.vmem %s33_s28, 128  ;;  %p1429_p2 = scmp.lt.s32.totalorder %s33_s28, %s33_s28 }
  0x60   :  { %p1425_p1 = scmp.ne.s32.totalorder %s33_s28, %s1424_s29  ;;  %p1430_p3 = scmp.lt.s32.totalorder %s1424_s29, %s1424_s29 }
  0x62   :  { %p1431_p4 = por %p1430_p3, %p1429_p2 }
  0x64   :  { %p1432_p5 = pnand %p1431_p4, %p1425_p1 }
  0x66   :  { %1435 = shalt.err (!%p1432_p5)
}
  0x67   :  { %35 = dma.hbm_to_vmem [thread:$0]  %s1834_s1, 128, %s33_s28, [#allocation3]  }
  0x68   :  { %s1570_s14 = smov [#allocation6]   ;;  %s1571_s26 = smov [#allocation9]  }
  0x69   :  { %s52_s2 = sshll.u32 %s1570_s14, 4  ;;  %s71_s15 = sshll.u32 %s1571_s26, 4  ;;  %s53_s2 = int_to_ptr.vmem [resolvable:$true] %s52_s2  ;;  %s1726_s15 = int_to_ptr.vmem [resolvable:$true] %s71_s15 }
  0x6a   :  { %s1436_s19 = scalar_lea.hbm %s1836_s3, 128 }
  0x6b   :  { %p1437_p6 = scmp.ne.s32.totalorder %s1836_s3, %s1436_s19  ;;  %p1440_p7 = scmp.lt.u32.totalorder %s1436_s19, %s1836_s3 }
  0x6d   :  { %p1442_p8 = pnand %p1440_p7, %p1437_p6 }
  0x6f   :  { %1445 = shalt.err (!%p1442_p8)
}
  0x70   :  { %s1446_s1 = scalar_lea.vmem %s53_s2, 128  ;;  %p1451_p10 = scmp.lt.s32.totalorder %s53_s2, %s53_s2 }
  0x71   :  { %p1447_p9 = scmp.ne.s32.totalorder %s53_s2, %s1446_s1  ;;  %p1452_p11 = scmp.lt.s32.totalorder %s1446_s1, %s1446_s1 }
  0x73   :  { %p1453_p12 = por %p1452_p11, %p1451_p10 }
  0x75   :  { %p1454_p13 = pnand %p1453_p12, %p1447_p9 }
  0x77   :  { %1457 = shalt.err (!%p1454_p13)
}
  0x78   :  { %55 = dma.hbm_to_vmem [thread:$0]  %s1836_s3, 128, %s53_s2, [#allocation5]  }
  0x79   :  { %s1458_s29 = scalar_lea.hbm %s1838_s5, 1024 }
  0x7a   :  { %p1459_p0 = scmp.ne.s32.totalorder %s1838_s5, %s1458_s29  ;;  %p1462_p1 = scmp.lt.u32.totalorder %s1458_s29, %s1838_s5 }
  0x7c   :  { %p1464_p2 = pnand %p1462_p1, %p1459_p0 }
  0x7e   :  { %1467 = shalt.err (!%p1464_p2)
}
  0x7f   :  { %s1468_s8 = scalar_lea.vmem %s1726_s15, 1024  ;;  %p1473_p4 = scmp.lt.s32.totalorder %s1726_s15, %s1726_s15 }
  0x80   :  { %p1469_p3 = scmp.ne.s32.totalorder %s1726_s15, %s1468_s8  ;;  %p1474_p5 = scmp.lt.s32.totalorder %s1468_s8, %s1468_s8 }
  0x82   :  { %p1475_p6 = por %p1474_p5, %p1473_p4 }
  0x84   :  { %p1476_p7 = pnand %p1475_p6, %p1469_p3 }
  0x86   :  { %1479 = shalt.err (!%p1476_p7)
}
  0x87   :  { %77 = dma.hbm_to_vmem [thread:$0]  %s1838_s5, 1024, %s1726_s15, [#allocation8], %s1564_s6, %s1564_s6, %s1565_s16  }
  0x88   :  { %s1572_s18 = smov [#allocation12]   ;;  %s1573_s20 = smov [#allocation15]  }
  0x89   :  { %s95_s19 = sshll.u32 %s1572_s18, 4  ;;  %s119_s21 = sshll.u32 %s1573_s20, 4  ;;  %s96_s19 = int_to_ptr.vmem [resolvable:$true] %s95_s19  ;;  %s1760_s21 = int_to_ptr.vmem [resolvable:$true] %s119_s21 }
  0x8a   :  { %s1480_s1 = scalar_lea.hbm %s1840_s7, 768 }
  0x8b   :  { %p1481_p8 = scmp.ne.s32.totalorder %s1840_s7, %s1480_s1  ;;  %p1484_p9 = scmp.lt.u32.totalorder %s1480_s1, %s1840_s7 }
  0x8d   :  { %p1486_p10 = pnand %p1484_p9, %p1481_p8 }
  0x8f   :  { %1489 = shalt.err (!%p1486_p10)
}
  0x90   :  { %s1490_s5 = scalar_lea.vmem %s96_s19, 768  ;;  %p1495_p12 = scmp.lt.s32.totalorder %s96_s19, %s96_s19 }
  0x91   :  { %p1491_p11 = scmp.ne.s32.totalorder %s96_s19, %s1490_s5  ;;  %p1496_p13 = scmp.lt.s32.totalorder %s1490_s5, %s1490_s5 }
  0x93   :  { %p1497_p0 = por %p1496_p13, %p1495_p12 }
  0x95   :  { %p1498_p1 = pnand %p1497_p0, %p1491_p11 }
  0x97   :  { %1501 = shalt.err (!%p1498_p1)
}
  0x98   :  { %101 = dma.hbm_to_vmem [thread:$0]  %s1840_s7, 768, %s96_s19, [#allocation11], %s1564_s6, %s1564_s6, %s1565_s16  }
  0x99   :  { %s1502_s14 = scalar_lea.hbm %s1842_s9, 4096 }
  0x9a   :  { %p1503_p2 = scmp.ne.s32.totalorder %s1842_s9, %s1502_s14  ;;  %p1506_p3 = scmp.lt.u32.totalorder %s1502_s14, %s1842_s9 }
  0x9c   :  { %p1508_p4 = pnand %p1506_p3, %p1503_p2 }
  0x9e   :  { %1511 = shalt.err (!%p1508_p4)
}
  0x9f   :  { %s1512_s18 = scalar_lea.vmem %s1760_s21, 4096  ;;  %p1517_p6 = scmp.lt.s32.totalorder %s1760_s21, %s1760_s21 }
  0xa0   :  { %p1513_p5 = scmp.ne.s32.totalorder %s1760_s21, %s1512_s18  ;;  %p1518_p7 = scmp.lt.s32.totalorder %s1512_s18, %s1512_s18 }
  0xa2   :  { %p1519_p8 = por %p1518_p7, %p1517_p6 }
  0xa4   :  { %p1520_p9 = pnand %p1519_p8, %p1513_p5 }
  0xa6   :  { %1523 = shalt.err (!%p1520_p9)
}
  0xa7   :  { %125 = dma.hbm_to_vmem [thread:$0]  %s1842_s9, 4096, %s1760_s21, [#allocation14], %s1568_s30, %s1568_s30, %s1569_s17  }
  0xa8   :  { %s1574_s16 = smov [#allocation18]   ;;  %s1524_s23 = scalar_lea.hbm %s1844_s11, 4096 }
  0xa9   :  { %s143_s19 = sshll.u32 %s1574_s16, 4  ;;  %p1525_p10 = scmp.ne.s32.totalorder %s1844_s11, %s1524_s23  ;;  %s144_s19 = int_to_ptr.vmem [resolvable:$true] %s143_s19 }
  0xaa   :  { %p1528_p11 = scmp.lt.u32.totalorder %s1524_s23, %s1844_s11 }
  0xac   :  { %p1530_p12 = pnand %p1528_p11, %p1525_p10 }
  0xae   :  { %1533 = shalt.err (!%p1530_p12)
}
  0xaf   :  { %s1534_s27 = scalar_lea.vmem %s144_s19, 4096  ;;  %p1539_p0 = scmp.lt.s32.totalorder %s144_s19, %s144_s19 }
  0xb0   :  { %p1535_p13 = scmp.ne.s32.totalorder %s144_s19, %s1534_s27  ;;  %p1540_p1 = scmp.lt.s32.totalorder %s1534_s27, %s1534_s27 }
  0xb2   :  { %p1541_p2 = por %p1540_p1, %p1539_p0 }
  0xb4   :  { %p1542_p3 = pnand %p1541_p2, %p1535_p13 }
  0xb6   :  { %1545 = shalt.err (!%p1542_p3)
}
  0xb7   :  { %149 = dma.hbm_to_vmem [thread:$0]  %s1844_s11, 4096, %s144_s19, [#allocation17], %s1568_s30, %s1568_s30, %s1569_s17  }
  0xb8   :  { %1546 = dma.done.wait [#allocation3], 128  }
  0xb9   :  { %1547 = vsyncadd [#allocation3], 4294967168 }
  0xba   :  { %1548 = dma.done.wait [#allocation5], 256  }
  0xbb   :  { %1549 = vsyncadd [#allocation5], 4294967040 }
  0xbc   :  { %1550 = dma.done.wait [#allocation8], 1152  }
  0xbd   :  { %1551 = vsyncadd [#allocation8], 4294966144 }
  0xbe   :  { %1552 = dma.done.wait [#allocation11], 2304  }
  0xbf   :  { %1553 = vsyncadd [#allocation11], 4294964992 }
  0xc0   :  { %1554 = dma.done.wait [#allocation14], 5120  }
  0xc1   :  { %1555 = vsyncadd [#allocation14], 4294962176 }
  0xc2   :  { %1556 = dma.done.wait [#allocation17], 8192  }
  0xc3   :  { %1557 = vsyncadd [#allocation17], 4294959104  ;;  %v1575_v0 = vmov 0.0   ;;  %v191_v1 = vld [vmem:[#allocation9 + $0x8] sm:$0xff]  ;;  %v193_v2 = vld [vmem:[#allocation9 + $0x18] sm:$0xff]  ;;  %vm198_vm0 = vcmask 261120  }
  0xc4   :  { %266 = vmatprep.mubr.f32.mxu0 %v1575_v0  ;;  %v190_v3 = vld [vmem:[#allocation9] sm:$0xff]  ;;  %v1148_v4 = vpack.c.bf16 %v193_v2, %v191_v1  ;;  %v192_v5 = vld [vmem:[#allocation9 + $0x10] sm:$0xff]  ;;  %v195_v6 = vld [vmem:[#allocation9 + $0x28] sm:$0xff]  ;;  %vm285_vm1 = vcmask 130048   ;;  %vm508_vm2 = vcmask 195584   ;;  %s1576_s5 = smov 32  }
  0xc5   :  { %v197_v7 = vld [vmem:[#allocation9 + $0x38] sm:$0xff]  ;;  %v1150_v8 = vpack.c.bf16 %v192_v5, %v190_v3  ;;  %v194_v10 = vld [vmem:[#allocation9 + $0x20] sm:$0xff]  ;;  %v196_v11 = vld [vmem:[#allocation9 + $0x30] sm:$0xff]  ;;  %vm1023_vm4 = vcmask 523264  }
  0xc6   :  { %v1152_v9 = vpack.c.bf16 %v197_v7, %v195_v6  ;;  %1149 = vmatprep.subr.bf16.mxu0 %v1148_v4  ;;  %v274_v12 = vld [vmem:[#allocation10 + $0x8] sm:$0xff]  ;;  %v280_v13 = vld [vmem:[#allocation10 + $0x38] sm:$0xff]  ;;  %v1154_v14 = vpack.c.bf16 %v196_v11, %v194_v10  ;;  %v273_v16 = vld [vmem:[#allocation10] sm:$0xff] }
  0xc7   :  { %1151 = vmatpush1.bf16.msra.mxu0 %v1150_v8  ;;  %v1156_v15 = vpack.c.bf16 %v280_v13, %v274_v12  ;;  %v279_v17 = vld [vmem:[#allocation10 + $0x30] sm:$0xff]  ;;  %v276_v18 = vld [vmem:[#allocation10 + $0x18] sm:$0xff]  ;;  %v282_v19 = vld [vmem:[#allocation10 + $0x48] sm:$0xff] }
  0xc8   :  { %1153 = vmatprep.subr.bf16.mxu0 %v1152_v9  ;;  %v185_v20 = vld [vmem:[%s1833_s0] sm:$0xff]  ;;  %v1158_v21 = vpack.c.bf16 %v279_v17, %v273_v16  ;;  %v1160_v22 = vpack.c.bf16 %v282_v19, %v276_v18  ;;  %v281_v24 = vld [vmem:[#allocation10 + $0x40] sm:$0xff]  ;;  %v278_v25 = vld [vmem:[#allocation10 + $0x28] sm:$0xff] }
  0xc9   :  { %v275_v23 = vld [vmem:[#allocation10 + $0x10] sm:$0xff]  ;;  %v284_v26 = vld [vmem:[#allocation10 + $0x58] sm:$0xff]  ;;  %v186_v27 = vld [vmem:[#allocation2] sm:$0xff] }
  0xca   :  { %v1162_v28 = vpack.c.bf16 %v281_v24, %v275_v23  ;;  %v1164_v29 = vpack.c.bf16 %v284_v26, %v278_v25  ;;  %v277_v30 = vld [vmem:[#allocation10 + $0x20] sm:$0xff]  ;;  %v283_v31 = vld [vmem:[#allocation10 + $0x50] sm:$0xff]  ;;  %v503_v32 = vld [vmem:[#allocation12 + $0x8] sm:$0xff] }
  0xcb   :  { %1155 = vmatpush1.bf16.msra.mxu0 %v1154_v14  ;;  %v505_v33 = vld [vmem:[#allocation12 + $0x18] sm:$0xff]  ;;  %v1166_v34 = vpack.c.bf16 %v283_v31, %v277_v30  ;;  %v502_v35 = vld [vmem:[#allocation12] sm:$0xff]  ;;  %v504_v37 = vld [vmem:[#allocation12 + $0x10] sm:$0xff] }
  0xcc   :  { %1157 = vmatprep.subr.bf16.mxu0 %v1156_v15  ;;  %v1168_v36 = vpack.c.bf16 %v505_v33, %v503_v32  ;;  %v717_v38 = vld [vmem:[#allocation16 + $0x80] sm:$0xff]  ;;  %v718_v39 = vld [vmem:[#allocation16 + $0x88] sm:$0xff]  ;;  %v1170_v43 = vpack.c.bf16 %v504_v37, %v502_v35  ;;  %v507_v44 = vld [vmem:[#allocation12 + $0x28] sm:$0xff] }
  0xcd   :  { %v1180_v40 = vpack.c.bf16 %v718_v39, %v717_v38  ;;  %v701_v41 = vld [vmem:[#allocation16] sm:$0xff]  ;;  %v702_v42 = vld [vmem:[#allocation16 + $0x8] sm:$0xff]  ;;  %v719_v46 = vld [vmem:[#allocation16 + $0x90] sm:$0xff] }
  0xce   :  { %1035 = vmatmul.mubr.msk.f32.vlgmr.msra.gmra.mrb[0].mxu0 %vm198_vm0, %v185_v20  ;;  %v1182_v45 = vpack.c.bf16 %v702_v42, %v701_v41  ;;  %v720_v47 = vld [vmem:[#allocation16 + $0x98] sm:$0xff]  ;;  %v584_v48 = vld [vmem:[#allocation13 + $0x8] sm:$0xff]  ;;  %v703_v50 = vld [vmem:[#allocation16 + $0x10] sm:$0xff] }
  0xcf   :  { %1159 = vmatpush1.bf16.msra.mxu0 %v1158_v21  ;;  %353 = vmatprep.mubr.f32.mxu0 %v1575_v0  ;;  %v1184_v49 = vpack.c.bf16 %v720_v47, %v719_v46  ;;  %v704_v51 = vld [vmem:[#allocation16 + $0x18] sm:$0xff]  ;;  %v583_v53 = vld [vmem:[#allocation13] sm:$0xff]  ;;  %v585_v56 = vld [vmem:[#allocation13 + $0x10] sm:$0xff] }
  0xd0   :  { %1161 = vmatprep.subr.bf16.mxu0 %v1160_v22  ;;  %1181 = vmatprep.subr.bf16.mxu1 %v1180_v40  ;;  %v586_v52 = vld [vmem:[#allocation13 + $0x18] sm:$0xff]  ;;  %v1186_v54 = vpack.c.bf16 %v704_v51, %v703_v50  ;;  %v721_v55 = vld [vmem:[#allocation16 + $0xa0] sm:$0xff]  ;;  %v588_v57 = vld [vmem:[#allocation13 + $0x28] sm:$0xff]  ;;  %v1174_v3 = vpack.c.bf16 %v585_v56, %v583_v53 }
  0xd1   :  { %1183 = vmatpush3.bf16.msra.mxu1 %v1182_v45  ;;  %v722_v58 = vld [vmem:[#allocation16 + $0xa8] sm:$0xff]  ;;  %v590_v59 = vld [vmem:[#allocation13 + $0x38] sm:$0xff]  ;;  %v705_v61 = vld [vmem:[#allocation16 + $0x20] sm:$0xff]  ;;  %v1172_v1 = vpack.c.bf16 %v586_v52, %v584_v48 }
  0xd2   :  { %1036 = vmatmul.mubr.msk.f32.vlgmr.msra.gmra.mrb[2].mxu0 %vm285_vm1, %v186_v27  ;;  %1185 = vmatprep.subr.bf16.mxu1 %v1184_v49  ;;  %v1188_v60 = vpack.c.bf16 %v722_v58, %v721_v55  ;;  %v706_v62 = vld [vmem:[#allocation16 + $0x28] sm:$0xff]  ;;  %v506_v63 = vld [vmem:[#allocation12 + $0x20] sm:$0xff]  ;;  %v187_v2 = vld [vmem:[#allocation4] sm:$0xff]  ;;  %v1176_v4 = vpack.c.bf16 %v590_v59, %v588_v57 }
  0xd3   :  { %1163 = vmatpush1.bf16.msra.mxu0 %v1162_v28  ;;  %424 = vmatprep.mubr.f32.mxu0 %v1575_v0  ;;  %v587_v5 = vld [vmem:[#allocation13 + $0x20] sm:$0xff]  ;;  %v589_v6 = vld [vmem:[#allocation13 + $0x30] sm:$0xff]  ;;  %v1190_v7 = vpack.c.bf16 %v706_v62, %v705_v61  ;;  %v684_v9 = vld [vmem:[#allocation15 + $0x88] sm:$0xff] }
  0xd4   :  { %1165 = vmatprep.subr.bf16.mxu0 %v1164_v29  ;;  %v683_v8 = vld [vmem:[#allocation15 + $0x80] sm:$0xff]  ;;  %v1178_v10 = vpack.c.bf16 %v589_v6, %v587_v5  ;;  %v668_v13 = vld [vmem:[#allocation15 + $0x8] sm:$0xff]  ;;  %v685_v14 = vld [vmem:[#allocation15 + $0x90] sm:$0xff] }
  0xd5   :  { %1187 = vmatpush3.bf16.msra.mxu1 %v1186_v54  ;;  %v1212_v11 = vpack.c.bf16 %v684_v9, %v683_v8  ;;  %v667_v12 = vld [vmem:[#allocation15] sm:$0xff]  ;;  %v686_v15 = vld [vmem:[#allocation15 + $0x98] sm:$0xff]  ;;  %v669_v19 = vld [vmem:[#allocation15 + $0x10] sm:$0xff] }
  0xd6   :  { %1037 = vmatmul.mubr.msk.f32.vlgmr.msra.gmra.mrb[4].mxu0 %vm285_vm1, %v186_v27  ;;  %1189 = vmatprep.subr.bf16.mxu1 %v1188_v60  ;;  %v188_v16 = vld [vmem:[#allocation6] sm:$0xff]  ;;  %v1214_v17 = vpack.c.bf16 %v668_v13, %v667_v12  ;;  %v1216_v18 = vpack.c.bf16 %v686_v15, %v685_v14  ;;  %v670_v20 = vld [vmem:[#allocation15 + $0x18] sm:$0xff]  ;;  %v688_v22 = vld [vmem:[#allocation15 + $0xa8] sm:$0xff] }
  0xd7   :  { %1167 = vmatpush1.bf16.msra.mxu0 %v1166_v34  ;;  %495 = vmatprep.mubr.f32.mxu0 %v1575_v0  ;;  %v687_v21 = vld [vmem:[#allocation15 + $0xa0] sm:$0xff]  ;;  %v672_v25 = vld [vmem:[#allocation15 + $0x28] sm:$0xff]  ;;  %v689_v26 = vld [vmem:[#allocation15 + $0xb0] sm:$0xff] }
  0xd8   :  { %1169 = vmatprep.subr.bf16.mxu0 %v1168_v36  ;;  %v1220_v23 = vpack.c.bf16 %v688_v22, %v687_v21  ;;  %v671_v24 = vld [vmem:[#allocation15 + $0x20] sm:$0xff]  ;;  %v673_v30 = vld [vmem:[#allocation15 + $0x30] sm:$0xff]  ;;  %v674_v31 = vld [vmem:[#allocation15 + $0x38] sm:$0xff] }
  0xd9   :  { %1191 = vmatpush3.bf16.msra.mxu1 %v1190_v7  ;;  %v1222_v28 = vpack.c.bf16 %v672_v25, %v671_v24  ;;  %v691_v32 = vld [vmem:[#allocation15 + $0xc0] sm:$0xff]  ;;  %v692_v33 = vld [vmem:[#allocation15 + $0xc8] sm:$0xff]  ;;  %v1226_v34 = vpack.c.bf16 %v674_v31, %v673_v30  ;;  %v693_v38 = vld [vmem:[#allocation15 + $0xd0] sm:$0xff] }
  0xda   :  { %1038 = vmatmul.mubr.msk.f32.vlgmr.msra.gmra.mrb[6].mxu0 %vm285_vm1, %v186_v27  ;;  %v690_v27 = vld [vmem:[#allocation15 + $0xb8] sm:$0xff]  ;;  %v1228_v35 = vpack.c.bf16 %v692_v33, %v691_v32  ;;  %v675_v36 = vld [vmem:[#allocation15 + $0x40] sm:$0xff]  ;;  %v676_v37 = vld [vmem:[#allocation15 + $0x48] sm:$0xff] }
  0xdb   :  { %1171 = vmatpush1.bf16.msra.mxu0 %v1170_v43  ;;  %576 = vmatprep.mubr.f32.mxu0 %v1575_v0  ;;  %v1224_v29 = vpack.c.bf16 %v690_v27, %v689_v26  ;;  %v694_v39 = vld [vmem:[#allocation15 + $0xd8] sm:$0xff]  ;;  %v1230_v40 = vpack.c.bf16 %v676_v37, %v675_v36  ;;  %v677_v42 = vld [vmem:[#allocation15 + $0x50] sm:$0xff]  ;;  %v695_v45 = vld [vmem:[#allocation15 + $0xe0] sm:$0xff] }
  0xdc   :  { %516 = vmatprep.subr.mxu0 %v507_v44  ;;  %v1232_v41 = vpack.c.bf16 %v694_v39, %v693_v38  ;;  %v678_v43 = vld [vmem:[#allocation15 + $0x58] sm:$0xff]  ;;  %v696_v46 = vld [vmem:[#allocation15 + $0xe8] sm:$0xff]  ;;  %v723_v48 = vld [vmem:[#allocation16 + $0xb0] sm:$0xff] }
  0xdd   :  { %v1234_v44 = vpack.c.bf16 %v678_v43, %v677_v42  ;;  %v1236_v47 = vpack.c.bf16 %v696_v46, %v695_v45  ;;  %v724_v49 = vld [vmem:[#allocation16 + $0xb8] sm:$0xff]  ;;  %v679_v50 = vld [vmem:[#allocation15 + $0x60] sm:$0xff]  ;;  %v680_v52 = vld [vmem:[#allocation15 + $0x68] sm:$0xff] }
  0xde   :  { %v1192_v51 = vpack.c.bf16 %v724_v49, %v723_v48  ;;  %v707_v53 = vld [vmem:[#allocation16 + $0x30] sm:$0xff]  ;;  %v708_v54 = vld [vmem:[#allocation16 + $0x38] sm:$0xff]  ;;  %v1238_v55 = vpack.c.bf16 %v680_v52, %v679_v50  ;;  %v725_v60 = vld [vmem:[#allocation16 + $0xc0] sm:$0xff] }
  0xdf   :  { %517 = vmatpush1.msra.mxu0 %v506_v63  ;;  %v1194_v56 = vpack.c.bf16 %v708_v54, %v707_v53  ;;  %v697_v57 = vld [vmem:[#allocation15 + $0xf0] sm:$0xff]  ;;  %v698_v58 = vld [vmem:[#allocation15 + $0xf8] sm:$0xff]  ;;  %v726_v61 = vld [vmem:[#allocation16 + $0xc8] sm:$0xff] }
  0xe0   :  { %1039 = vmatmul.mubr.msk.f32.vlgmr.msra.gmra.mrb[8].mxu0 %vm508_vm2, %v187_v2  ;;  %1173 = vmatprep.subr.bf16.mxu0 %v1172_v1  ;;  %v1240_v59 = vpack.c.bf16 %v698_v58, %v697_v57  ;;  %v681_v62 = vld [vmem:[#allocation15 + $0x70] sm:$0xff]  ;;  %v1196_v63 = vpack.c.bf16 %v726_v61, %v725_v60  ;;  %v682_v1 = vld [vmem:[#allocation15 + $0x78] sm:$0xff]  ;;  %v709_v2 = vld [vmem:[#allocation16 + $0x40] sm:$0xff] }
  0xe1   :  { %1175 = vmatpush1.bf16.msra.mxu0 %v1174_v3  ;;  %658 = vmatprep.mubr.f32.mxu0 %v1575_v0  ;;  %v1218_v0 = vpack.c.bf16 %v670_v20, %v669_v19  ;;  %v710_v3 = vld [vmem:[#allocation16 + $0x48] sm:$0xff]  ;;  %v727_v6 = vld [vmem:[#allocation16 + $0xd0] sm:$0xff]  ;;  %v728_v7 = vld [vmem:[#allocation16 + $0xd8] sm:$0xff] }
  0xe2   :  { %1177 = vmatprep.subr.bf16.mxu0 %v1176_v4  ;;  %1193 = vmatprep.subr.bf16.mxu1 %v1192_v51  ;;  %v1242_v4 = vpack.c.bf16 %v682_v1, %v681_v62  ;;  %v1198_v5 = vpack.c.bf16 %v710_v3, %v709_v2  ;;  %v1200_v8 = vpack.c.bf16 %v728_v7, %v727_v6  ;;  %v711_v9 = vld [vmem:[#allocation16 + $0x50] sm:$0xff]  ;;  %v729_v12 = vld [vmem:[#allocation16 + $0xe0] sm:$0xff]  ;;  %v730_v13 = vld [vmem:[#allocation16 + $0xe8] sm:$0xff] }
  0xe3   :  { %1195 = vmatpush3.bf16.msra.mxu1 %v1194_v56  ;;  %v1204_v14 = vpack.c.bf16 %v730_v13, %v729_v12  ;;  %v713_v15 = vld [vmem:[#allocation16 + $0x60] sm:$0xff]  ;;  %v732_v19 = vld [vmem:[#allocation16 + $0xf8] sm:$0xff]  ;;  %v715_v21 = vld [vmem:[#allocation16 + $0x70] sm:$0xff] }
  0xe4   :  { %1197 = vmatprep.subr.bf16.mxu1 %v1196_v63  ;;  %v716_v22 = vld [vmem:[#allocation16 + $0x78] sm:$0xff]  ;;  %v892_v24 = vld [vmem:[#allocation18 + $0x88] sm:$0xff]  ;;  %v875_v36 = vld [vmem:[#allocation18] sm:$0xff] }
  0xe5   :  { %1179 = vmatpush1.bf16.msra.mxu0 %v1178_v10  ;;  %v712_v10 = vld [vmem:[#allocation16 + $0x58] sm:$0xff]  ;;  %v876_v37 = vld [vmem:[#allocation18 + $0x8] sm:$0xff]  ;;  %v893_v39 = vld [vmem:[#allocation18 + $0x90] sm:$0xff] }
  0xe6   :  { %1213 = vmatprep.subr.bf16.mxu0 %v1212_v11  ;;  %v1202_v11 = vpack.c.bf16 %v712_v10, %v711_v9  ;;  %v877_v46 = vld [vmem:[#allocation18 + $0x10] sm:$0xff]  ;;  %v895_v48 = vld [vmem:[#allocation18 + $0xa0] sm:$0xff]  ;;  %v896_v49 = vld [vmem:[#allocation18 + $0xa8] sm:$0xff] }
  0xe7   :  { %1199 = vmatpush3.bf16.msra.mxu1 %v1198_v5  ;;  %v1252_v51 = vpack.c.bf16 %v896_v49, %v895_v48  ;;  %v879_v52 = vld [vmem:[#allocation18 + $0x20] sm:$0xff]  ;;  %v880_v53 = vld [vmem:[#allocation18 + $0x28] sm:$0xff]  ;;  %v898_v56 = vld [vmem:[#allocation18 + $0xb8] sm:$0xff] }
  0xe8   :  { %1040 = vmatmul.mubr.msk.f32.vlgmr.msra.gmra.mrb[10].mxu0 %vm198_vm0, %v188_v16  ;;  %1201 = vmatprep.subr.bf16.mxu1 %v1200_v8  ;;  %v714_v16 = vld [vmem:[#allocation16 + $0x68] sm:$0xff]  ;;  %v1254_v60 = vpack.c.bf16 %v880_v53, %v879_v52  ;;  %v881_v62 = vld [vmem:[#allocation18 + $0x30] sm:$0xff]  ;;  %v882_v63 = vld [vmem:[#allocation18 + $0x38] sm:$0xff] }
  0xe9   :  { %1215 = vmatpush3.bf16.msra.mxu0 %v1214_v17  ;;  %v1206_v17 = vpack.c.bf16 %v714_v16, %v713_v15  ;;  %v899_v1 = vld [vmem:[#allocation18 + $0xc0] sm:$0xff]  ;;  %v900_v2 = vld [vmem:[#allocation18 + $0xc8] sm:$0xff]  ;;  %v1258_v3 = vpack.c.bf16 %v882_v63, %v881_v62  ;;  %v901_v7 = vld [vmem:[#allocation18 + $0xd0] sm:$0xff] }
  0xea   :  { %1217 = vmatprep.subr.bf16.mxu0 %v1216_v18  ;;  %v731_v18 = vld [vmem:[#allocation16 + $0xf0] sm:$0xff]  ;;  %v883_v5 = vld [vmem:[#allocation18 + $0x40] sm:$0xff]  ;;  %v884_v6 = vld [vmem:[#allocation18 + $0x48] sm:$0xff] }
  0xeb   :  { %1203 = vmatpush3.bf16.msra.mxu1 %v1202_v11  ;;  %v1208_v20 = vpack.c.bf16 %v732_v19, %v731_v18  ;;  %v902_v8 = vld [vmem:[#allocation18 + $0xd8] sm:$0xff]  ;;  %v1262_v9 = vpack.c.bf16 %v884_v6, %v883_v5  ;;  %v885_v11 = vld [vmem:[#allocation18 + $0x50] sm:$0xff]  ;;  %v903_v13 = vld [vmem:[#allocation18 + $0xe0] sm:$0xff] }
  0xec   :  { %1205 = vmatprep.subr.bf16.mxu1 %v1204_v14  ;;  %v1264_v10 = vpack.c.bf16 %v902_v8, %v901_v7  ;;  %v886_v12 = vld [vmem:[#allocation18 + $0x58] sm:$0xff]  ;;  %v904_v14 = vld [vmem:[#allocation18 + $0xe8] sm:$0xff]  ;;  %v905_v19 = vld [vmem:[#allocation18 + $0xf0] sm:$0xff] }
  0xed   :  { %1219 = vmatpush3.bf16.msra.mxu0 %v1218_v0  ;;  %v1210_v0 = vpack.c.bf16 %v716_v22, %v715_v21  ;;  %v1266_v15 = vpack.c.bf16 %v886_v12, %v885_v11  ;;  %v1268_v16 = vpack.c.bf16 %v904_v14, %v903_v13  ;;  %v888_v18 = vld [vmem:[#allocation18 + $0x68] sm:$0xff] }
  0xee   :  { %1221 = vmatprep.subr.bf16.mxu0 %v1220_v23  ;;  %v891_v23 = vld [vmem:[#allocation18 + $0x80] sm:$0xff] }
  0xef   :  { %1207 = vmatpush3.bf16.msra.mxu1 %v1206_v17  ;;  %v1244_v25 = vpack.c.bf16 %v892_v24, %v891_v23  ;;  %v887_v17 = vld [vmem:[#allocation18 + $0x60] sm:$0xff]  ;;  %v890_v23 = vld [vmem:[#allocation18 + $0x78] sm:$0xff] }
  0xf0   :  { %1209 = vmatprep.subr.bf16.mxu1 %v1208_v20  ;;  %v906_v20 = vld [vmem:[#allocation18 + $0xf8] sm:$0xff]  ;;  %v1270_v21 = vpack.c.bf16 %v888_v18, %v887_v17 }
  0xf1   :  { %1223 = vmatpush3.bf16.msra.mxu0 %v1222_v28  ;;  %v1272_v22 = vpack.c.bf16 %v906_v20, %v905_v19 }
  0xf2   :  { %1225 = vmatprep.subr.bf16.mxu0 %v1224_v29 }
  0xf3   :  { %1211 = vmatpush3.bf16.msra.mxu1 %v1210_v0  ;;  %v889_v0 = vld [vmem:[#allocation18 + $0x70] sm:$0xff] }
  0xf4   :  { %1245 = vmatprep.subr.bf16.mxu1 %v1244_v25  ;;  %v1274_v24 = vpack.c.bf16 %v890_v23, %v889_v0 }
  0xf5   :  { %1227 = vmatpush3.bf16.msra.mxu0 %v1226_v34 }
  0xf6   :  { %1229 = vmatprep.subr.bf16.mxu0 %v1228_v35 }
  0xf9   :  { %1231 = vmatpush3.bf16.msra.mxu0 %v1230_v40  ;;  %v894_v40 = vld [vmem:[#allocation18 + $0x98] sm:$0xff] }
  0xfa   :  { %1233 = vmatprep.subr.bf16.mxu0 %v1232_v41  ;;  %v1248_v45 = vpack.c.bf16 %v894_v40, %v893_v39 }
  0xfd   :  { %1235 = vmatpush3.bf16.msra.mxu0 %v1234_v44  ;;  %v1246_v44 = vpack.c.bf16 %v876_v37, %v875_v36 }
  0xfe   :  { %1237 = vmatprep.subr.bf16.mxu0 %v1236_v47  ;;  %v878_v47 = vld [vmem:[#allocation18 + $0x18] sm:$0xff] }
  0xff   :  { %v1250_v50 = vpack.c.bf16 %v878_v47, %v877_v46  ;;  %v189_v46 = vld [vmem:[#allocation7] sm:$0xff] }
 0x101   :  { %1239 = vmatpush3.bf16.msra.mxu0 %v1238_v55  ;;  %v897_v55 = vld [vmem:[#allocation18 + $0xb0] sm:$0xff] }
 0x102   :  { %1241 = vmatprep.subr.bf16.mxu0 %v1240_v59  ;;  %v1256_v61 = vpack.c.bf16 %v898_v56, %v897_v55 }
 0x105   :  { %1243 = vmatpush3.bf16.msra.mxu0 %v1242_v4  ;;  %v1260_v4 = vpack.c.bf16 %v900_v2, %v899_v1 }
 0x1a1   :  { %v268_v26 = vpop.f32.mrb[0].mxu0 }
 0x1a2   :  { %v270_v27 = vpop.f32.mrb[1].mxu0 }
 0x1a5   :  { %v355_v28 = vpop.f32.mrb[2].mxu0 }
 0x1a6   :  { %v665_v29 = vmul.f32 %v355_v28, %v268_v26  ;;  %v357_v30 = vpop.f32.mrb[3].mxu0 }
 0x1a7   :  { %v666_v31 = vmul.f32 %v357_v30, %v270_v27 }
 0x1a9   :  { %v426_v32 = vpop.f32.mrb[4].mxu0  ;;  %867 = vmatprep.mubr.f32.mxu0 %v666_v31 }
 0x1aa   :  { %v428_v33 = vpop.f32.mrb[5].mxu0  ;;  %868 = vmatmul.mubr.f32.vlgmr.msra.gmra.mrb[12].mxu0 %v665_v29 }
 0x1ad   :  { %v497_v34 = vpop.f32.mrb[6].mxu0 }
 0x1ae   :  { %v499_v35 = vpop.f32.mrb[7].mxu0 }
 0x1b3   :  { %v578_v38 = vpop.f32.mrb[8].mxu0 }
 0x1b4   :  { %v699_v41 = vmul.f32 %v578_v38, %v426_v32  ;;  %v580_v42 = vpop.f32.mrb[9].mxu0 }
 0x1b5   :  { %v700_v43 = vmul.f32 %v580_v42, %v428_v33 }
 0x1b7   :  { %797 = vmatprep.mubr.f32.mxu1 %v700_v43 }
 0x1b8   :  { %798 = vmatmul.mubr.f32.vlgmr.msra.gmra.mrb[0].mxu1 %v699_v41  ;;  %v986_v41 = vlaneseq }
 0x1b9   :  { %1247 = vmatpush3.bf16.msra.mxu1 %v1246_v44 }
 0x1ba   :  { %1249 = vmatprep.subr.bf16.mxu1 %v1248_v45  ;;  %v987_v42 = vand.u32 127, %v986_v41 }
 0x1bb   :  { %v660_v54 = vpop.f32.mrb[10].mxu0 }
 0x1bc   :  { %v873_v57 = vmul.f32 %v660_v54, %v497_v34  ;;  %v662_v58 = vpop.f32.mrb[11].mxu0  ;;  %vm988_vm3 = vcmp.lt.s32.totalorder %v987_v42, 96 }
 0x1bd   :  { %v874_v59 = vmul.f32 %v662_v58, %v499_v35  ;;  %1251 = vmatpush3.bf16.msra.mxu1 %v1250_v50  ;;  %v1041_v35 = vld [vmem:[%s1845_s12] ss:$0 sm:$0xff]  ;;  %s1577_s12 = smov 64  }
 0x1be   :  { %1253 = vmatprep.subr.bf16.mxu1 %v1252_v51 }
 0x1bf   :  { %971 = vmatprep.mubr.f32.mxu1 %v874_v59 }
 0x1c1   :  { %1255 = vmatpush3.bf16.msra.mxu1 %v1254_v60 }
 0x1c2   :  { %1257 = vmatprep.subr.bf16.mxu1 %v1256_v61 }
 0x1c5   :  { %1259 = vmatpush3.bf16.msra.mxu1 %v1258_v3 }
 0x1c6   :  { %1261 = vmatprep.subr.bf16.mxu1 %v1260_v4 }
 0x1c9   :  { %1263 = vmatpush3.bf16.msra.mxu1 %v1262_v9 }
 0x1ca   :  { %1265 = vmatprep.subr.bf16.mxu1 %v1264_v10 }
 0x1cd   :  { %1267 = vmatpush3.bf16.msra.mxu1 %v1266_v15 }
 0x1ce   :  { %1269 = vmatprep.subr.bf16.mxu1 %v1268_v16 }
 0x1d1   :  { %1271 = vmatpush3.bf16.msra.mxu1 %v1270_v21 }
 0x1d2   :  { %1273 = vmatprep.subr.bf16.mxu1 %v1272_v22 }
 0x1d5   :  { %1275 = vmatpush3.bf16.msra.mxu1 %v1274_v24 }
 0x1d8   :  { %972 = vmatmul.mubr.f32.vlgmr.msra.gmra.mrb[2].mxu1 %v873_v57 }
 0x27d   :  { %v1110_v25 = vpop.f32.mrb[12].mxu0 }
 0x27e   :  { %v1111_v26 = vpop.f32.mrb[13].mxu0 }
 0x27f   :  { %v1112_v27 = vadd.f32 %v1111_v26, %v1110_v25 }
 0x28b   :  { %v1075_v28 = vpop.f32.mrb[0].mxu1 }
 0x28c   :  { %v1076_v29 = vpop.f32.mrb[1].mxu1 }
 0x28d   :  { %v1077_v30 = vadd.f32 %v1076_v29, %v1075_v28 }
 0x28f   :  { %v870_v31 = vadd.f32 %v1112_v27, %v1077_v30 }
 0x2ab   :  { %v1145_v32 = vpop.f32.mrb[2].mxu1 }
 0x2ac   :  { %v1146_v33 = vpop.f32.mrb[3].mxu1 }
 0x2ad   :  { %v1147_v34 = vadd.f32 %v1146_v33, %v1145_v32 }
 0x2af   :  { %v977_v36 = vadd.f32 %v1147_v34, %v870_v31 }
 0x2b1   :  { %v985_v37 = vadd.f32 %v1041_v35, %v977_v36 }
 0x2b3   :  { %v1042_v38 = vmul.f32 -1.442695, %v985_v37 }
 0x2b5   :  { %1296 = vpow2.f32 %v1042_v38 }
 0x2b6   :  { %1298 = vtanh.f32 %v985_v37 }
 0x2bf   :  { %v1297_v39 = vpop.eup %1296 }
 0x2c0   :  { %v992_v40 = vadd.f32 1.0, %v1297_v39  ;;  %v1299_v43 = vpop.eup %1298 }
 0x2c2   :  { %1300 = vrcp.f32 %v992_v40 }
 0x2cc   :  { %v1301_v44 = vpop.eup %1300 }
 0x2cd   :  { %v996_v45 = vsel %vm988_vm3, %v1301_v44, %v1299_v43 }
 0x2ce   :  { %1003 = vrot.lane.b32.xlu0 %v996_v45, %s1576_s5 }
 0x2d2   :  { %998 = vrot.lane.b32.xlu0 %v189_v46, %s1576_s5 }
 0x340   :  { %v1004_v47 = vpop.permute.xlu0 %1003 }
 0x341   :  { %v1006_v48 = vmul.f32 %v1004_v47, %v996_v45 }
 0x343   :  { %1008 = vrot.lane.b32.xlu1 %v1006_v48, %s1576_s5 }
 0x344   :  { %v999_v49 = vpop.permute.xlu0 %998 }
 0x345   :  { %v1001_v50 = vmul.f32 %v999_v49, %v996_v45 }
 0x3b5   :  { %v1009_v51 = vpop.permute.xlu1 %1008 }
 0x3b6   :  { %v1011_v52 = vadd.f32 %v1009_v51, %v1001_v50 }
 0x3b8   :  { %1302 = vtanh.f32 %v1011_v52 }
 0x3c2   :  { %v1303_v53 = vpop.eup %1302 }
 0x3c3   :  { %1014 = vrot.lane.b32.xlu1 %v1303_v53, %s1576_s5 }
 0x435   :  { %v1015_v54 = vpop.permute.xlu1 %1014 }
 0x436   :  { %v1017_v55 = vmul.f32 %v1015_v54, %v996_v45 }
 0x438   :  { %1019 = vrot.lane.b32.xlu0 %v1017_v55, %s1577_s12 }
 0x4aa   :  { %v1020_v56 = vpop.permute.xlu0 %1019 }
 0x4ab   :  { %v1022_v57 = vsel %vm198_vm0, %v1020_v56, %v1011_v52 }
 0x4ac   :  { %1024 = vst.msk [vmem:[%s1846_s13] sm:$0xff] %vm1023_vm4, %v1022_v57 }
 0x4ad   :  { %1029 = vsyncpa [#allocation3], 1 }
 0x4ae   :  { %1030 = vsyncpa [#allocation5], 1 }
 0x4af   :  { %1031 = vsyncpa [#allocation8], 1 }
 0x4b0   :  { %1032 = vsyncpa [#allocation11], 1 }
 0x4b1   :  { %1033 = vsyncpa [#allocation14], 1 }
 0x4b2   :  { %1034 = vsyncpa [#allocation17], 1 }

</bundles_post_ra>
